<compile_context>
chip_gen: v7x
topology: tpu7x:2x2x1
jax: 0.10.0
libtpu: 0.0.40
codegen_flags: <defaults>
</compile_context>

<pallas_src>
import functools

import jax
import jax.numpy as jnp
from jax.experimental import pallas as pl
from jax.experimental.pallas import tpu as pltpu

COMPUTE_DTYPE = jnp.bfloat16        # MXU input dtype (f32 accumulate everywhere)
VMEM_LIMIT = 32 * 1024 * 1024       # explicit scoped-VMEM limit (safe on v5e/v6e/v7x)
LN_EPS = 1e-5


# ---------------------------------------------------------------------------
# small helpers
# ---------------------------------------------------------------------------
def _round_up(x, m):
    return ((x + m - 1) // m) * m


def _gelu(x):
    # exact (erf) GELU, matching torch.nn.GELU() default
    return 0.5 * x * (1.0 + jax.lax.erf(x * 0.7071067811865476))


def _layernorm(x, eps=LN_EPS):
    # LayerNorm over last axis, elementwise_affine=False (PyTorch eps=1e-5)
    mu = jnp.mean(x, axis=-1, keepdims=True)
    var = jnp.mean((x - mu) ** 2, axis=-1, keepdims=True)
    return (x - mu) * jax.lax.rsqrt(var + eps)


# ---------------------------------------------------------------------------
# generic tiled dense:  y = act(x @ W + b),   W stored (K, O)
# ---------------------------------------------------------------------------
def _dense_kernel(x_ref, w_ref, b_ref, o_ref, acc_ref, *, activation):
    k = pl.program_id(2)

    @pl.when(k == 0)
    def _():
        acc_ref[...] = jnp.zeros_like(acc_ref)

    acc_ref[...] += jnp.dot(
        x_ref[...].astype(COMPUTE_DTYPE),
        w_ref[...].astype(COMPUTE_DTYPE),
        preferred_element_type=jnp.float32)

    @pl.when(k == pl.num_programs(2) - 1)
    def _():
        y = acc_ref[...] + b_ref[...]
        if activation == "gelu":
            y = _gelu(y)
        o_ref[...] = y.astype(o_ref.dtype)


def dense(x2d, w, b, activation=None, *, tm=256, to=256, tk=512):
    """x2d: (M, K) f32, w: (K, O), b: (O,)  ->  (M, O) f32."""
    M, K = x2d.shape
    Kw, O = w.shape
    assert K == Kw

    tm = min(tm, _round_up(M, 8))
    Mp = _round_up(M, tm)
    to = min(to, _round_up(O, 128))
    Op = _round_up(O, to)
    if K <= tk:
        tk = K
        Kp = K
    else:
        Kp = _round_up(K, tk)

    xp = jnp.pad(x2d, ((0, Mp - M), (0, Kp - K)))
    wp = jnp.pad(w, ((0, Kp - K), (0, Op - O)))
    bp = jnp.pad(b, ((0, Op - O),)).astype(jnp.float32).reshape(1, Op)

    out = pl.pallas_call(
        functools.partial(_dense_kernel, activation=activation),
        out_shape=jax.ShapeDtypeStruct((Mp, Op), jnp.float32),
        grid=(Mp // tm, Op // to, Kp // tk),
        in_specs=[
            pl.BlockSpec((tm, tk), lambda i, j, k: (i, k)),
            pl.BlockSpec((tk, to), lambda i, j, k: (k, j)),
            pl.BlockSpec((1, to), lambda i, j, k: (0, j)),
        ],
        out_specs=pl.BlockSpec((tm, to), lambda i, j, k: (i, j)),
        scratch_shapes=[pltpu.VMEM((tm, to), jnp.float32)],
        compiler_params=pltpu.CompilerParams(
            dimension_semantics=("parallel", "parallel", "arbitrary"),
            vmem_limit_bytes=VMEM_LIMIT),
    )(xp, wp, bp)
    return out[:M, :O]


# ---------------------------------------------------------------------------
# attention: per (batch, head) program, lane-dense (N, head_dim) output slabs
# ---------------------------------------------------------------------------
def _attn_kernel(x_ref, wq_ref, wk_ref, wv_ref, o_ref, *, scale):
    x = x_ref[0].astype(COMPUTE_DTYPE)                             # (N, D)
    q = _layernorm(jnp.dot(x, wq_ref[0], preferred_element_type=jnp.float32))
    k = _layernorm(jnp.dot(x, wk_ref[0], preferred_element_type=jnp.float32))
    v = jnp.dot(x, wv_ref[0], preferred_element_type=jnp.float32)  # (N, hd)

    # TODO(synk): for long sequences switch to an online-softmax (flash) loop
    # over key tiles instead of the dense (N, N) score matrix.
    s = jax.lax.dot_general(
        q.astype(COMPUTE_DTYPE), k.astype(COMPUTE_DTYPE),
        (((1,), (1,)), ((), ())), preferred_element_type=jnp.float32) * scale
    s = s - jnp.max(s, axis=-1, keepdims=True)
    e = jnp.exp(s)
    p = e * pl.reciprocal(jnp.sum(e, axis=-1, keepdims=True), approx=True)
    o_ref[0, 0] = jnp.dot(p.astype(COMPUTE_DTYPE), v.astype(COMPUTE_DTYPE),
                          preferred_element_type=jnp.float32)


# ---------------------------------------------------------------------------
# fused  out = LayerNorm(attn_out + parallel) + x   (residual epilogue)
# ---------------------------------------------------------------------------
def _add_ln_residual_kernel(attn_ref, par_ref, x_ref, o_ref):
    y = attn_ref[...] + par_ref[...]
    o_ref[...] = _layernorm(y) + x_ref[...]


def add_ln_residual(attn_out, par, x2d):
    M, D = x2d.shape
    tm = min(256, _round_up(M, 8))
    Mp = _round_up(M, tm)
    pad = ((0, Mp - M), (0, 0))
    out = pl.pallas_call(
        _add_ln_residual_kernel,
        out_shape=jax.ShapeDtypeStruct((Mp, D), jnp.float32),
        grid=(Mp // tm,),
        in_specs=[
            pl.BlockSpec((tm, D), lambda i: (i, 0)),
            pl.BlockSpec((tm, D), lambda i: (i, 0)),
            pl.BlockSpec((tm, D), lambda i: (i, 0)),
        ],
        out_specs=pl.BlockSpec((tm, D), lambda i: (i, 0)),
        compiler_params=pltpu.CompilerParams(
            dimension_semantics=("parallel",), vmem_limit_bytes=VMEM_LIMIT),
    )(jnp.pad(attn_out, pad), jnp.pad(par, pad), jnp.pad(x2d, pad))
    return out[:M]


# ---------------------------------------------------------------------------
# BatchNorm1d (training-mode batch stats, identity affine) + GELU
# ---------------------------------------------------------------------------
def _bn_gelu_kernel(x_ref, o_ref):
    x = x_ref[...]
    mu = jnp.mean(x, axis=0, keepdims=True)
    var = jnp.mean((x - mu) ** 2, axis=0, keepdims=True)
    o_ref[...] = _gelu((x - mu) * jax.lax.rsqrt(var + LN_EPS))


def bn_gelu(x2d):
    B, F = x2d.shape
    tc = 512 if F % 512 == 0 else F
    return pl.pallas_call(
        _bn_gelu_kernel,
        out_shape=jax.ShapeDtypeStruct((B, F), jnp.float32),
        grid=(F // tc,),
        in_specs=[pl.BlockSpec((B, tc), lambda j: (0, j))],
        out_specs=pl.BlockSpec((B, tc), lambda j: (0, j)),
        compiler_params=pltpu.CompilerParams(
            dimension_semantics=("parallel",), vmem_limit_bytes=VMEM_LIMIT),
    )(x2d)


# ---------------------------------------------------------------------------
# one Residual(ParallelAttentionFeed) layer
# ---------------------------------------------------------------------------
def transformer_layer(x, lp):
    B, N, D = x.shape
    heads = lp["heads"]
    hd = D // heads

    attn_v = pl.pallas_call(
        functools.partial(_attn_kernel, scale=float(D) ** -0.5),
        out_shape=jax.ShapeDtypeStruct((B, heads, N, hd), jnp.float32),
        grid=(B, heads),
        in_specs=[
            pl.BlockSpec((1, N, D), lambda b, h: (b, 0, 0)),
            pl.BlockSpec((1, D, hd), lambda b, h: (h, 0, 0)),
            pl.BlockSpec((1, D, hd), lambda b, h: (h, 0, 0)),
            pl.BlockSpec((1, D, hd), lambda b, h: (h, 0, 0)),
        ],
        out_specs=pl.BlockSpec((1, 1, N, hd), lambda b, h: (b, h, 0, 0)),
        compiler_params=pltpu.CompilerParams(
            dimension_semantics=("parallel", "parallel"),
            vmem_limit_bytes=VMEM_LIMIT),
    )(x, lp["wq"], lp["wk"], lp["wv"])

    # rearrange 'b h n d -> b n (h d)' in the wrapper (plain XLA transpose)
    attn_v = attn_v.transpose(0, 2, 1, 3).reshape(B * N, D)
    x2d = x.reshape(B * N, D)

    attn_out = dense(attn_v, lp["wo"], lp["bo"])                 # to_out
    h1 = dense(x2d, lp["w1"], lp["b1"], activation="gelu")       # parallel MLP up + GELU
    par = dense(h1, lp["w2"], lp["b2"])                          # parallel MLP down
    out = add_ln_residual(attn_out, par, x2d)                    # layer_norm2 + Residual
    return out.reshape(B, N, D)


# ---------------------------------------------------------------------------
# parameters + full forward
# ---------------------------------------------------------------------------
def init_params(key, *, image_size, patch_size, num_classes, dim, depth, heads,
                mlp_dim, channels=3):
    assert image_size % patch_size == 0
    assert dim % heads == 0
    num_patches = (image_size // patch_size) ** 2
    patch_dim = channels * patch_size ** 2
    hd = dim // heads

    keys = jax.random.split(key, 6 + depth)

    def dense_w(k, in_f, out_f, std=0.02):
        # MXU-native (in_features, out_features), stored in COMPUTE_DTYPE
        return (jax.random.normal(k, (in_f, out_f), jnp.float32) * std).astype(COMPUTE_DTYPE)

    layers = []
    for i in range(depth):
        lk = jax.random.split(keys[6 + i], 6)
        # per-head qkv weights: wq[h] corresponds to Wqkv_torch[h*hd:(h+1)*hd, :].T, etc.
        wq = (jax.random.normal(lk[0], (heads, dim, hd), jnp.float32) * 0.02).astype(COMPUTE_DTYPE)
        wk = (jax.random.normal(lk[1], (heads, dim, hd), jnp.float32) * 0.02).astype(COMPUTE_DTYPE)
        wv = (jax.random.normal(lk[2], (heads, dim, hd), jnp.float32) * 0.02).astype(COMPUTE_DTYPE)
        layers.append(dict(
            heads=heads,
            wq=wq, wk=wk, wv=wv,
            wo=dense_w(lk[3], dim, dim),
            bo=jnp.zeros((dim,), jnp.float32),
            w1=dense_w(lk[4], dim, mlp_dim),
            b1=jnp.zeros((mlp_dim,), jnp.float32),
            w2=dense_w(lk[5], mlp_dim, dim),
            b2=jnp.zeros((dim,), jnp.float32),
        ))

    return dict(
        patch_size=patch_size,
        dim=dim,
        pos_embedding=jax.random.normal(keys[0], (1, num_patches + 1, dim), jnp.float32),
        cls_token=jax.random.normal(keys[1], (1, 1, dim), jnp.float32),
        w_patch=dense_w(keys[2], patch_dim, dim),
        b_patch=jnp.zeros((dim,), jnp.float32),
        layers=layers,
        w_h1=dense_w(keys[3], dim, mlp_dim),
        b_h1=jnp.zeros((mlp_dim,), jnp.float32),
        w_h2=dense_w(keys[4], mlp_dim, num_classes),
        b_h2=jnp.zeros((num_classes,), jnp.float32),
    )


def vit22b_forward(img, params):
    # TODO(synk): the optional attention `mask` path is never forwarded by
    # Transformer22B to its layers, so it is omitted.
    B, C, H, W = img.shape
    p = params["patch_size"]
    dim = params["dim"]

    # rearrange 'b c (h p1) (w p2) -> b (h w) (p1 p2 c)'
    x = img.reshape(B, C, H // p, p, W // p, p)
    x = x.transpose(0, 2, 4, 3, 5, 1).reshape(B, (H // p) * (W // p), p * p * C)

    # patch_to_embedding (tiled Pallas dense)
    Bn, Np, PD = x.shape
    x = dense(x.reshape(Bn * Np, PD), params["w_patch"], params["b_patch"])
    x = x.reshape(B, Np, dim)

    # cls token + positional embedding
    cls = jnp.broadcast_to(params["cls_token"], (B, 1, dim))
    x = jnp.concatenate([cls, x], axis=1)
    x = x + params["pos_embedding"]

    # transformer stack
    for lp in params["layers"]:
        x = transformer_layer(x, lp)

    # cls-token readout + mlp_head: Linear -> BatchNorm1d -> GELU -> Linear
    x_cls = x[:, 0]                                            # (B, dim)
    h = dense(x_cls, params["w_h1"], params["b_h1"])           # (B, mlp_dim)
    h = bn_gelu(h)
    logits = dense(h, params["w_h2"], params["b_h2"])          # (B, num_classes)
    return logits


if __name__ == "__main__":
    key = jax.random.PRNGKey(0)
    pkey, ikey = jax.random.split(key)

    B, C, IMG, PATCH = 2, 3, 16, 8
    DIM, DEPTH, HEADS, MLP_DIM, NUM_CLASSES = 32, 2, 4, 64, 10

    params = init_params(
        pkey,
        image_size=IMG, patch_size=PATCH, num_classes=NUM_CLASSES,
        dim=DIM, depth=DEPTH, heads=HEADS, mlp_dim=MLP_DIM, channels=C,
    )
    img = jax.random.normal(ikey, (B, C, IMG, IMG), dtype=jnp.float32)

    out = vit22b_forward(img, params)
    out = jax.block_until_ready(out)
    assert out.shape == (B, NUM_CLASSES)
    assert bool(jnp.all(jnp.isfinite(out)))
    print("KERNEL_OK")
</pallas_src>

<mosaic_0001>
module attributes {stable_mosaic.version = 11 : i64} {
  func.func @_dense_kernel(%arg0: i32, %arg1: i32, %arg2: i32, %arg3: memref<8x192xf32, #tpu.memory_space<vmem>>, %arg4: memref<192x128xbf16, #tpu.memory_space<vmem>>, %arg5: memref<1x128xf32, #tpu.memory_space<vmem>>, %arg6: memref<8x128xf32, #tpu.memory_space<vmem>>, %arg7: memref<8x128xf32, #tpu.memory_space<vmem>>) attributes {dimension_semantics = [#tpu.dimension_semantics<parallel>, #tpu.dimension_semantics<parallel>, #tpu.dimension_semantics<arbitrary>], iteration_bounds = array<i64: 1, 1, 1>, scalar_prefetch = 0 : i64, scratch_operands = 1 : i64, tpu.core_type = #tpu.core_type<tc>, window_params = [{transform_indices = @transform_0, window_bounds = array<i64: 8, 192>}, {transform_indices = @transform_1, window_bounds = array<i64: 192, 128>}, {transform_indices = @transform_2, window_bounds = array<i64: 1, 128>}, {transform_indices = @transform_3, window_bounds = array<i64: 8, 128>}]} {
    %c0_i32 = arith.constant 0 : i32
    %0 = arith.cmpi eq, %arg2, %c0_i32 : i32
    %1 = arith.extui %0 : i1 to i32
    %c0_i32_0 = arith.constant 0 : i32
    %2 = arith.cmpi ne, %1, %c0_i32_0 : i32
    scf.if %2 {
      %cst_10 = arith.constant 0.000000e+00 : f32
      %13 = vector.broadcast %cst_10 : f32 to vector<8x128xf32>
      %c0_11 = arith.constant 0 : index
      %c0_12 = arith.constant 0 : index
      %14 = vector.load %arg7[%c0_11, %c0_12] : memref<8x128xf32, #tpu.memory_space<vmem>>, vector<8x128xf32>
      tpu.vector_store %arg7[%c0_11, %c0_12], %13 {strides = array<i32>} : memref<8x128xf32, #tpu.memory_space<vmem>>, vector<8x128xf32>,
    } else {
    }
    %c0 = arith.constant 0 : index
    %c0_1 = arith.constant 0 : index
    %3 = vector.load %arg7[%c0, %c0_1] : memref<8x128xf32, #tpu.memory_space<vmem>>, vector<8x128xf32>
    %c0_2 = arith.constant 0 : index
    %c0_3 = arith.constant 0 : index
    %4 = vector.load %arg3[%c0_2, %c0_3] : memref<8x192xf32, #tpu.memory_space<vmem>>, vector<8x192xf32>
    %5 = arith.truncf %4 : vector<8x192xf32> to vector<8x192xbf16>
    %c0_4 = arith.constant 0 : index
    %c0_5 = arith.constant 0 : index
    %6 = vector.load %arg4[%c0_4, %c0_5] : memref<192x128xbf16, #tpu.memory_space<vmem>>, vector<192x128xbf16>
    %cst = arith.constant dense<0.000000e+00> : vector<8x128xf32>
    %7 = tpu.matmul %5, %6, %cst {dimension_numbers = #tpu.dot_dimension_numbers<[1], [0], [0], [1], [0, 0, 1, 1], [], []>} : vector<8x192xbf16>, vector<192x128xbf16>, vector<8x128xf32> -> vector<8x128xf32>
    %8 = arith.addf %3, %7 : vector<8x128xf32>
    %c0_6 = arith.constant 0 : index
    %c0_7 = arith.constant 0 : index
    %9 = vector.load %arg7[%c0_6, %c0_7] : memref<8x128xf32, #tpu.memory_space<vmem>>, vector<8x128xf32>
    tpu.vector_store %arg7[%c0_6, %c0_7], %8 {strides = array<i32>} : memref<8x128xf32, #tpu.memory_space<vmem>>, vector<8x128xf32>,
    %c0_i32_8 = arith.constant 0 : i32
    %10 = arith.cmpi eq, %arg2, %c0_i32_8 : i32
    %11 = arith.extui %10 : i1 to i32
    %c0_i32_9 = arith.constant 0 : i32
    %12 = arith.cmpi ne, %11, %c0_i32_9 : i32
    scf.if %12 {
      %c0_10 = arith.constant 0 : index
      %c0_11 = arith.constant 0 : index
      %13 = vector.load %arg7[%c0_10, %c0_11] : memref<8x128xf32, #tpu.memory_space<vmem>>, vector<8x128xf32>
      %c0_12 = arith.constant 0 : index
      %c0_13 = arith.constant 0 : index
      %14 = vector.load %arg5[%c0_12, %c0_13] : memref<1x128xf32, #tpu.memory_space<vmem>>, vector<1x128xf32>
      %15 = vector.broadcast %14 : vector<1x128xf32> to vector<8x128xf32>
      %16 = arith.addf %13, %15 : vector<8x128xf32>
      %c0_14 = arith.constant 0 : index
      %c0_15 = arith.constant 0 : index
      %17 = vector.load %arg6[%c0_14, %c0_15] : memref<8x128xf32, #tpu.memory_space<vmem>>, vector<8x128xf32>
      tpu.vector_store %arg6[%c0_14, %c0_15], %16 {strides = array<i32>} : memref<8x128xf32, #tpu.memory_space<vmem>>, vector<8x128xf32>,
    } else {
    }
    return
  }
  func.func @transform_0(%arg0: i32, %arg1: i32, %arg2: i32) -> (i32, i32) {
    %c0_i32 = arith.constant 0 : i32
    return %arg0, %arg2 : i32, i32
  }
  func.func @transform_1(%arg0: i32, %arg1: i32, %arg2: i32) -> (i32, i32) {
    %c0_i32 = arith.constant 0 : i32
    return %arg2, %arg1 : i32, i32
  }
  func.func @transform_2(%arg0: i32, %arg1: i32, %arg2: i32) -> (i32, i32) {
    %c0_i32 = arith.constant 0 : i32
    %c0_i32_0 = arith.constant 0 : i32
    return %c0_i32, %arg1 : i32, i32
  }
  func.func @transform_3(%arg0: i32, %arg1: i32, %arg2: i32) -> (i32, i32) {
    %c0_i32 = arith.constant 0 : i32
    return %arg0, %arg1 : i32, i32
  }
}

</mosaic_0001>

<bundles_post_ra>
// kernel: tpu_custom_call.1
= control target key start
LH: loop header
LB: loop body
LE: loop exit
PB: predicated region body
PF: predicated region fallthrough
CT: control target
= control target key end

     0   :  { %8 = vsyncpa [#allocation4], 0  ;;  %s399_s0 = inlined_call_operand.hbm [shape: f32[8,192], index: 0, kind: input, shape index: {}]   ;;  %s400_s1 = inlined_call_operand.hbm [shape: bf16[192,128], index: 1, kind: input, shape index: {}]   ;;  %s401_s2 = inlined_call_operand.vmem [shape: f32[1,128], index: 2, kind: input, shape index: {}]   ;;  %s402_s3 = inlined_call_operand.hbm [shape: f32[8,128], index: 3, kind: output, shape index: {}]  }
   0x1   :  { %9 = vsyncpa [#allocation7], 0 }
   0x2   :  { %10 = vsyncpa [#allocation5], 0  ;;  %s327_s12 = smov [#allocation3]   ;;  %s328_s14 = smov [#allocation6]  }
   0x3   :  { %s17_s13 = sshll.u32 %s327_s12, 4  ;;  %s26_s15 = sshll.u32 %s328_s14, 4  ;;  %s18_s13 = int_to_ptr.vmem [resolvable:$true] %s17_s13  ;;  %s353_s15 = int_to_ptr.vmem [resolvable:$true] %s26_s15 }
   0x4   :  { %s255_s18 = scalar_lea.hbm %s399_s0, 256 }
   0x5   :  { %p256_p0 = scmp.ne.s32.totalorder %s399_s0, %s255_s18  ;;  %p259_p1 = scmp.lt.u32.totalorder %s255_s18, %s399_s0 }
   0x7   :  { %p261_p2 = pnand %p259_p1, %p256_p0 }
   0x9   :  { %264 = shalt.err (!%p261_p2)
}
   0xa   :  { %s265_s23 = scalar_lea.vmem %s18_s13, 256  ;;  %p270_p4 = scmp.lt.s32.totalorder %s18_s13, %s18_s13 }
   0xb   :  { %p266_p3 = scmp.ne.s32.totalorder %s18_s13, %s265_s23  ;;  %p271_p5 = scmp.lt.s32.totalorder %s265_s23, %s265_s23 }
   0xd   :  { %p272_p6 = por %p271_p5, %p270_p4 }
   0xf   :  { %p273_p7 = pnand %p272_p6, %p266_p3 }
  0x11   :  { %276 = shalt.err (!%p273_p7)
}
  0x12   :  { %20 = dma.hbm_to_vmem [thread:$0]  %s399_s0, 256, %s18_s13, [#allocation4]  }
  0x13   :  { %s277_s28 = scalar_lea.hbm %s400_s1, 1536 }
  0x14   :  { %p278_p8 = scmp.ne.s32.totalorder %s400_s1, %s277_s28  ;;  %p281_p9 = scmp.lt.u32.totalorder %s277_s28, %s400_s1 }
  0x16   :  { %p283_p10 = pnand %p281_p9, %p278_p8 }
  0x18   :  { %286 = shalt.err (!%p283_p10)
}
  0x19   :  { %s287_s6 = scalar_lea.vmem %s353_s15, 1536  ;;  %p292_p12 = scmp.lt.s32.totalorder %s353_s15, %s353_s15 }
  0x1a   :  { %p288_p11 = scmp.ne.s32.totalorder %s353_s15, %s287_s6  ;;  %p293_p13 = scmp.lt.s32.totalorder %s287_s6, %s287_s6 }
  0x1c   :  { %p294_p0 = por %p293_p13, %p292_p12 }
  0x1e   :  { %p295_p1 = pnand %p294_p0, %p288_p11 }
  0x20   :  { %298 = shalt.err (!%p295_p1)
}
  0x21   :  { %s329_s0 = smov 64   ;;  %s330_s7 = smov 4  }
  0x22   :  { %32 = dma.hbm_to_vmem [thread:$0]  %s400_s1, 1536, %s353_s15, [#allocation7], %s329_s0, %s329_s0, %s330_s7  }
  0x23   :  { %321 = dma.done.wait [#allocation4], 256  }
  0x24   :  { %322 = vsyncadd [#allocation4], 4294967040 }
  0x25   :  { %323 = dma.done.wait [#allocation7], 1536  }
  0x26   :  { %324 = vsyncadd [#allocation7], 4294965760  ;;  %v331_v0 = vmov 0   ;;  %v243_v1 = vld [vmem:[#allocation6] sm:$0xff]   ;;  %v244_v2 = vld [vmem:[#allocation6 + $0x8] sm:$0xff]   ;;  %vm148_vm0 = vcmask 523264  }
  0x27   :  { %152 = vmatprep.subr.bf16.mxu0 %v331_v0  ;;  %v245_v3 = vld [vmem:[#allocation6 + $0x10] sm:$0xff]   ;;  %v246_v4 = vld [vmem:[#allocation6 + $0x18] sm:$0xff]   ;;  %v247_v7 = vld [vmem:[#allocation6 + $0x20] sm:$0xff]   ;;  %s332_s11 = smov [#allocation8]  }
  0x28   :  { %153 = vmatpush1.bf16.msra.mxu0 %v243_v1  ;;  %v49_v5 = vld [vmem:[#allocation3 + $0x8] sm:$0xff]  ;;  %v248_v8 = vld [vmem:[#allocation6 + $0x28] sm:$0xff]   ;;  %v249_v9 = vld [vmem:[#allocation6 + $0x30] sm:$0xff]   ;;  %s213_s12 = sshll.u32 %s332_s11, 4  ;;  %s214_s12 = int_to_ptr.vmem [resolvable:$true] %s213_s12 }
  0x29   :  { %154 = vmatprep.subr.bf16.mxu0 %v331_v0  ;;  %v51_v6 = vpack.c.bf16 %v49_v5, %v49_v5  ;;  %v250_v10 = vld [vmem:[#allocation6 + $0x38] sm:$0xff]   ;;  %v251_v11 = vld [vmem:[#allocation6 + $0x40] sm:$0xff]   ;;  %v252_v12 = vld [vmem:[#allocation6 + $0x48] sm:$0xff]   ;;  %s299_s13 = scalar_lea.vmem %s214_s12, 128  ;;  %p304_p3 = scmp.lt.s32.totalorder %s214_s12, %s214_s12 }
  0x2a   :  { %v253_v13 = vld [vmem:[#allocation6 + $0x50] sm:$0xff]   ;;  %v254_v14 = vld [vmem:[#allocation6 + $0x58] sm:$0xff]   ;;  %p300_p2 = scmp.ne.s32.totalorder %s214_s12, %s299_s13  ;;  %p305_p4 = scmp.lt.s32.totalorder %s299_s13, %s299_s13 }
  0x2b   :  { %235 = vmatprep.mubr.msk.bf16.mxu0 %vm148_vm0, %v51_v6  ;;  %v48_v15 = vld [vmem:[#allocation3] sm:$0xff] }
  0x2c   :  { %155 = vmatpush1.bf16.msra.mxu0 %v244_v2  ;;  %v50_v16 = vpack.c.bf16 %v48_v15, %v48_v15  ;;  %v236_v17 = vld [vmem:[%s401_s2] ss:$0 sm:$0xff]  ;;  %p306_p5 = por %p305_p4, %p304_p3 }
  0x2d   :  { %156 = vmatprep.subr.bf16.mxu0 %v331_v0 }
  0x2e   :  { %p307_p6 = pnand %p306_p5, %p300_p2 }
  0x30   :  { %157 = vmatpush1.bf16.msra.mxu0 %v245_v3 }
  0x31   :  { %158 = vmatprep.subr.bf16.mxu0 %v331_v0 }
  0x34   :  { %159 = vmatpush1.bf16.msra.mxu0 %v246_v4 }
  0x35   :  { %160 = vmatprep.subr.bf16.mxu0 %v331_v0 }
  0x38   :  { %161 = vmatpush1.bf16.msra.mxu0 %v247_v7 }
  0x39   :  { %162 = vmatprep.subr.bf16.mxu0 %v331_v0 }
  0x3c   :  { %163 = vmatpush1.bf16.msra.mxu0 %v248_v8 }
  0x3d   :  { %164 = vmatprep.subr.bf16.mxu0 %v331_v0 }
  0x40   :  { %165 = vmatpush1.bf16.msra.mxu0 %v249_v9 }
  0x41   :  { %166 = vmatprep.subr.bf16.mxu0 %v331_v0 }
  0x44   :  { %167 = vmatpush1.bf16.msra.mxu0 %v250_v10 }
  0x45   :  { %168 = vmatprep.subr.bf16.mxu0 %v331_v0 }
  0x48   :  { %169 = vmatpush1.bf16.msra.mxu0 %v251_v11 }
  0x49   :  { %170 = vmatprep.subr.bf16.mxu0 %v331_v0 }
  0x4c   :  { %171 = vmatpush1.bf16.msra.mxu0 %v252_v12 }
  0x4d   :  { %172 = vmatprep.subr.bf16.mxu0 %v331_v0 }
  0x50   :  { %173 = vmatpush1.bf16.msra.mxu0 %v253_v13 }
  0x51   :  { %174 = vmatprep.subr.bf16.mxu0 %v331_v0 }
  0x54   :  { %175 = vmatpush1.bf16.msra.mxu0 %v254_v14 }
  0x57   :  { %185 = vmatmul.mubr.bf16.vlgmr.msra.gmra.mrb[0].mxu0 %v50_v16 }
 0x12a   :  { %v186_v18 = vpop.f32.mrb[0].mxu0 }
 0x12b   :  { %v205_v19 = vadd.f32 %v236_v17, %v186_v18  ;;  %v188_v20 = vpop.f32.mrb[1].mxu0 }
 0x12c   :  { %v189_v21 = vpop.f32.mrb[2].mxu0 }
 0x12d   :  { %206 = vst [vmem:[#allocation8] sm:$0xff] %v205_v19  ;;  %v190_v22 = vpop.f32.mrb[3].mxu0 }
 0x12e   :  { %310 = shalt.err (!%p307_p6)
}
 0x12f   :  { %s311_s2 = scalar_lea.hbm %s402_s3, 128 }
 0x130   :  { %p312_p7 = scmp.ne.s32.totalorder %s402_s3, %s311_s2  ;;  %p315_p8 = scmp.lt.u32.totalorder %s311_s2, %s402_s3 }
 0x132   :  { %p317_p9 = pnand %p315_p8, %p312_p7 }
 0x134   :  { %320 = shalt.err (!%p317_p9)
}
 0x135   :  { %216 = dma.vmem_to_hbm [thread:$0]  %s214_s12, 128, %s402_s3, [#allocation5]  }
 0x136   :  { %325 = dma.done.wait [#allocation5], 128  }
 0x137   :  { %326 = vsyncadd [#allocation5], 4294967168 }
 0x138   :  { %220 = vsyncpa [#allocation4], 1 }
 0x139   :  { %221 = vsyncpa [#allocation7], 1 }
 0x13a   :  { %222 = vsyncpa [#allocation5], 1 }

</bundles_post_ra>
